<compile_context>
chip_gen: v6e
topology: v6e:2x2x1
jax: 0.10.0
libtpu: 0.0.40
codegen_flags: <defaults>
</compile_context>

<pallas_src>
import math

import jax
import jax.numpy as jnp
from jax.experimental import pallas as pl
from jax.experimental.pallas import tpu as pltpu

# ----------------------------- model hyper-params -----------------------------
B = 8            # batch (chosen so RLAT = B*T1 = 128 -> fully lane-dense)
C_IN = 2         # in_channels
T = 64           # sequence length
DOWN = 4         # encoder downsample_factor (== latent_factor)
C_LAT = 8        # encoder out_channels (context_channels[inject_depth])
CH0 = 16         # channels[0]
CH1 = 32         # channels[1]
INJECT_DEPTH = 1
T1 = T // DOWN
RLAT = B * T1            # 128  (lane axis everywhere)
DC_IN = DOWN * C_IN      # 8    (full-res rows, phase-in-sublane)
DCH0 = DOWN * CH0        # 64

# ------------------------- packed weight-slab layout ---------------------------
R_WENC = 0                      # (C_LAT, DC_IN)
R_W0 = 8                        # (DCH0,  DC_IN)   block-diag layer-0
R_W1 = 72                       # (CH1,   DCH0)    patchify / downsample
R_W2A = 104                     # (CH1,   CH1)     inject: main path
R_W2B = 136                     # (CH1,   C_LAT)   inject: latent path
R_W3 = 168                      # (DCH0,  CH1)     upsample
R_W4 = 232                      # (DC_IN, DCH0)    block-diag output head
R_BIAS = 240                    # 64-row bias band, one column per vector
SLAB_ROWS = R_BIAS + DCH0       # 304
BC_ENC, BC_B0, BC_W0S, BC_B1, BC_B2, BC_B3, BC_B4 = range(7)

# data-slab rows
D_X = 0                         # rows 0:8    clean x (phase-in-sublane)
D_N = DC_IN                     # rows 8:16   noise
D_SIG = 2 * DC_IN               # row 16      sigma      (per column = per batch elem)
D_ALPHA = D_SIG + 1             # row 17      cos(pi/2 * sigma)
D_BETA = D_SIG + 2              # row 18      sin(pi/2 * sigma)
DATA_ROWS = D_BETA + 1          # 19


# ------------------------- fused DiffusionAE forward kernel --------------------
def _fused_kernel(d_ref, w_ref, loss_ref, latent_ref):
    # ---- data (all lane-dense; column = b*T1 + t1, row = d*C + c) ----
    x = d_ref[D_X:D_X + DC_IN, :]                  # (8, 128) -- one vreg
    noise = d_ref[D_N:D_N + DC_IN, :]              # (8, 128)
    sig = d_ref[D_SIG:D_SIG + 1, :]                # (1, 128)
    alpha = d_ref[D_ALPHA:D_ALPHA + 1, :]          # (1, 128)
    beta = d_ref[D_BETA:D_BETA + 1, :]             # (1, 128)

    # ---- weights: static views of the single packed slab (no per-array DMAs) ----
    w_enc = w_ref[R_WENC:R_WENC + C_LAT, 0:DC_IN]
    w0 = w_ref[R_W0:R_W0 + DCH0, 0:DC_IN]
    w1 = w_ref[R_W1:R_W1 + CH1, 0:DCH0]
    w2a = w_ref[R_W2A:R_W2A + CH1, 0:CH1]
    w2b = w_ref[R_W2B:R_W2B + CH1, 0:C_LAT]
    w3 = w_ref[R_W3:R_W3 + DCH0, 0:CH1]
    w4 = w_ref[R_W4:R_W4 + DC_IN, 0:DCH0]
    bb = w_ref[R_BIAS:R_BIAS + DCH0, 0:8]          # bias band (64, 8)
    b_enc = bb[0:C_LAT, BC_ENC:BC_ENC + 1]
    b0 = bb[:, BC_B0:BC_B0 + 1]
    w0s = bb[:, BC_W0S:BC_W0S + 1]
    b1 = bb[0:CH1, BC_B1:BC_B1 + 1]
    b2 = bb[0:CH1, BC_B2:BC_B2 + 1]
    b3 = bb[:, BC_B3:BC_B3 + 1]
    b4 = bb[0:DC_IN, BC_B4:BC_B4 + 1]

    # ---- v-diffusion noising (sublane-broadcast VPU ops on single vregs) ----
    x_noisy = alpha * x + beta * noise

    # ---- encoder: Conv1d(k=stride=DOWN) == ONE (8,8)x(8,128) matmul + tanh bottleneck ----
    latent = jnp.tanh(jnp.dot(w_enc, x, preferred_element_type=jnp.float32) + b_enc)
    latent_ref[...] = latent                       # lane-dense (8,128) store

    # ---- net layer 0 (block-diagonal over phases) + rank-1 sigma conditioning ----
    # TODO(synk): tanh-approx GELU; PyTorch nn.GELU default is exact erf.
    h0 = jnp.dot(w0, x_noisy, preferred_element_type=jnp.float32)
    h0 = jax.nn.gelu(h0 + w0s * sig + b0, approximate=True)          # (64, 128)

    # ---- downsample (patchify): ONE packed matmul ----
    h1 = jax.nn.gelu(jnp.dot(w1, h0, preferred_element_type=jnp.float32) + b1,
                     approximate=True)                                # (32, 128)

    # ---- latent injection at inject_depth (channel concat == two matmuls) ----
    h2 = (jnp.dot(w2a, h1, preferred_element_type=jnp.float32)
          + jnp.dot(w2b, latent, preferred_element_type=jnp.float32))
    h2 = jax.nn.gelu(h2 + b2, approximate=True)                       # (32, 128)

    # ---- upsample: ONE packed matmul ----
    h3 = jax.nn.gelu(jnp.dot(w3, h2, preferred_element_type=jnp.float32) + b3,
                     approximate=True)                                # (64, 128)

    # ---- output head (block-diagonal) ----
    v_pred = jnp.dot(w4, h3, preferred_element_type=jnp.float32) + b4  # (8, 128)

    # ---- deferred v-target + MSE, ONE cross-lane reduction ----
    v_target = alpha * noise - beta * x
    diff = v_pred - v_target
    loss_ref[0, 0] = jnp.sum(diff * diff) * (1.0 / (B * C_IN * T))


def _fused_forward(data_slab, w_slab):
    vmem = pl.BlockSpec(memory_space=pltpu.MemorySpace.VMEM)
    smem = pl.BlockSpec(memory_space=pltpu.MemorySpace.SMEM)
    return pl.pallas_call(
        _fused_kernel,
        out_shape=(
            jax.ShapeDtypeStruct((1, 1), jnp.float32),       # scalar loss
            jax.ShapeDtypeStruct((C_LAT, RLAT), jnp.float32)  # latent (lane-dense)
        ),
        in_specs=[vmem, vmem],
        out_specs=(smem, vmem),
    )(data_slab, w_slab)


# --------------------------- parameter initialization --------------------------
def init_params(key):
    ks = jax.random.split(key, 14)
    s = 0.1
    nrm = lambda k, shp: s * jax.random.normal(k, shp, jnp.float32)

    # natural parameterization (same synthetic net as before)
    w_enc = nrm(ks[0], (DOWN, C_IN, C_LAT))   # per-tap encoder Conv1d weights
    b_enc = nrm(ks[1], (C_LAT,))
    w0 = nrm(ks[2], (C_IN, CH0))
    w0sig = nrm(ks[3], (CH0,))                # rank-1 sigma conditioning
    b0 = nrm(ks[4], (CH0,))
    w1 = nrm(ks[5], (DOWN, CH0, CH1))         # patchify / downsample
    b1 = nrm(ks[6], (CH1,))
    w2a = nrm(ks[7], (CH1, CH1))              # latent injection @ inject_depth
    w2b = nrm(ks[8], (C_LAT, CH1))
    b2 = nrm(ks[9], (CH1,))
    w3 = nrm(ks[10], (DOWN, CH1, CH0))        # upsample
    b3 = nrm(ks[11], (DOWN, CH0))
    w4 = nrm(ks[12], (CH0, C_IN))             # output head
    b4 = nrm(ks[13], (C_IN,))

    # ---- host-side packing to feature-major single-matmul forms ----
    eye = jnp.eye(DOWN, dtype=jnp.float32)
    w_encT = jnp.transpose(w_enc, (2, 0, 1)).reshape(C_LAT, DC_IN)    # [l, d*C_IN+c]
    w0_bd = jnp.kron(eye, w0.T)                                       # (DCH0, DC_IN)
    w1T = jnp.transpose(w1, (2, 0, 1)).reshape(CH1, DCH0)             # [k, d*CH0+j]
    w2aT = w2a.T
    w2bT = w2b.T
    w3T = jnp.transpose(w3, (0, 2, 1)).reshape(DCH0, CH1)             # [d*CH0+j, k]
    w4_bd = jnp.kron(eye, w4.T)                                       # (DC_IN, DCH0)
    b0_rep = jnp.tile(b0, DOWN)                                       # [d*CH0+j] -> b0[j]
    w0s_rep = jnp.tile(w0sig, DOWN)
    b3_rep = b3.reshape(DCH0)                                         # per-phase bias
    b4_rep = jnp.tile(b4, DOWN)                                       # [d*C_IN+c] -> b4[c]

    W = jnp.zeros((SLAB_ROWS, 128), jnp.float32)
    W = W.at[R_WENC:R_WENC + C_LAT, 0:DC_IN].set(w_encT)
    W = W.at[R_W0:R_W0 + DCH0, 0:DC_IN].set(w0_bd)
    W = W.at[R_W1:R_W1 + CH1, 0:DCH0].set(w1T)
    W = W.at[R_W2A:R_W2A + CH1, 0:CH1].set(w2aT)
    W = W.at[R_W2B:R_W2B + CH1, 0:C_LAT].set(w2bT)
    W = W.at[R_W3:R_W3 + DCH0, 0:CH1].set(w3T)
    W = W.at[R_W4:R_W4 + DC_IN, 0:DCH0].set(w4_bd)
    W = W.at[R_BIAS:R_BIAS + C_LAT, BC_ENC].set(b_enc)
    W = W.at[R_BIAS:R_BIAS + DCH0, BC_B0].set(b0_rep)
    W = W.at[R_BIAS:R_BIAS + DCH0, BC_W0S].set(w0s_rep)
    W = W.at[R_BIAS:R_BIAS + CH1, BC_B1].set(b1)
    W = W.at[R_BIAS:R_BIAS + CH1, BC_B2].set(b2)
    W = W.at[R_BIAS:R_BIAS + DCH0, BC_B3].set(b3_rep)
    W = W.at[R_BIAS:R_BIAS + DC_IN, BC_B4].set(b4_rep)
    return {"w_slab": W}


# ------------------------------ DiffusionAE forward ----------------------------
def diffusion_ae_forward(x, params, key):
    """Returns (loss, latent), mirroring DiffusionAE.forward(x, with_info=True)."""
    b, c_in, t = x.shape
    t1 = t // DOWN
    k_sig, k_noise = jax.random.split(key)
    sigmas = jax.random.uniform(k_sig, (b,), jnp.float32)              # U(0,1) per batch elem
    # iid N(0,1) noise drawn directly in the packed layout (statistically equivalent
    # to the reference; not bit-identical pairing for a fixed torch seed).
    noise_pk = jax.random.normal(k_noise, (DOWN * c_in, b * t1), jnp.float32)

    # feature-major, phase-in-sublane packing: row = d*C_IN + c, column = b*T1 + t1
    x_pk = jnp.transpose(x.reshape(b, c_in, t1, DOWN), (3, 1, 0, 2)).reshape(
        DOWN * c_in, b * t1)

    # alpha/beta from B scalars (cheap), expanded to one (1, RLAT) lane row each
    angle = sigmas * (math.pi / 2.0)
    sig_row = jnp.repeat(sigmas, t1)[None, :]
    alpha_row = jnp.repeat(jnp.cos(angle), t1)[None, :]
    beta_row = jnp.repeat(jnp.sin(angle), t1)[None, :]

    data_slab = jnp.concatenate(
        [x_pk, noise_pk, sig_row, alpha_row, beta_row], axis=0)        # (19, 128)

    loss2d, latent_cm = _fused_forward(data_slab, params["w_slab"])

    latent = latent_cm.reshape(C_LAT, b, t1).transpose(1, 0, 2)        # (B, C_LAT, T1)
    return loss2d[0, 0], latent


# TODO(synk): DiffusionAE.decode() (VSampler multi-step sampling loop) is inference-only
# and not part of forward(); it is not implemented here.

if __name__ == "__main__":
    root = jax.random.PRNGKey(0)
    k_param, k_data, k_diff = jax.random.split(root, 3)
    params = init_params(k_param)
    x = jax.random.normal(k_data, (B, C_IN, T), jnp.float32)

    loss, latent = jax.jit(diffusion_ae_forward)(x, params, k_diff)
    jax.block_until_ready((loss, latent))
    assert loss.shape == () and latent.shape == (B, C_LAT, T1)
    assert bool(jnp.isfinite(loss))
    print("KERNEL_OK")
</pallas_src>

<mosaic_0001>
module attributes {stable_mosaic.version = 11 : i64} {
  func.func @_fused_kernel(%arg0: memref<19x128xf32, #tpu.memory_space<vmem>>, %arg1: memref<304x128xf32, #tpu.memory_space<vmem>>, %arg2: memref<1x1xf32, #tpu.memory_space<smem>>, %arg3: memref<8x128xf32, #tpu.memory_space<vmem>>) attributes {dimension_semantics = [], scalar_prefetch = 0 : i64, scratch_operands = 0 : i64, tpu.core_type = #tpu.core_type<tc>} {
    %c0 = arith.constant 0 : index
    %c0_0 = arith.constant 0 : index
    %0 = vector.load %arg0[%c0, %c0_0] : memref<19x128xf32, #tpu.memory_space<vmem>>, vector<8x128xf32>
    %c8 = arith.constant 8 : index
    %c0_1 = arith.constant 0 : index
    %1 = vector.load %arg0[%c8, %c0_1] : memref<19x128xf32, #tpu.memory_space<vmem>>, vector<8x128xf32>
    %c16 = arith.constant 16 : index
    %c0_2 = arith.constant 0 : index
    %2 = vector.load %arg0[%c16, %c0_2] : memref<19x128xf32, #tpu.memory_space<vmem>>, vector<1x128xf32>
    %c17 = arith.constant 17 : index
    %c0_3 = arith.constant 0 : index
    %3 = vector.load %arg0[%c17, %c0_3] : memref<19x128xf32, #tpu.memory_space<vmem>>, vector<1x128xf32>
    %c18 = arith.constant 18 : index
    %c0_4 = arith.constant 0 : index
    %4 = vector.load %arg0[%c18, %c0_4] : memref<19x128xf32, #tpu.memory_space<vmem>>, vector<1x128xf32>
    %c0_5 = arith.constant 0 : index
    %c0_6 = arith.constant 0 : index
    %5 = vector.load %arg1[%c0_5, %c0_6] : memref<304x128xf32, #tpu.memory_space<vmem>>, vector<8x8xf32>
    %c8_7 = arith.constant 8 : index
    %c0_8 = arith.constant 0 : index
    %6 = vector.load %arg1[%c8_7, %c0_8] : memref<304x128xf32, #tpu.memory_space<vmem>>, vector<64x8xf32>
    %c72 = arith.constant 72 : index
    %c0_9 = arith.constant 0 : index
    %7 = vector.load %arg1[%c72, %c0_9] : memref<304x128xf32, #tpu.memory_space<vmem>>, vector<32x64xf32>
    %c104 = arith.constant 104 : index
    %c0_10 = arith.constant 0 : index
    %8 = vector.load %arg1[%c104, %c0_10] : memref<304x128xf32, #tpu.memory_space<vmem>>, vector<32x32xf32>
    %c136 = arith.constant 136 : index
    %c0_11 = arith.constant 0 : index
    %9 = vector.load %arg1[%c136, %c0_11] : memref<304x128xf32, #tpu.memory_space<vmem>>, vector<32x8xf32>
    %c168 = arith.constant 168 : index
    %c0_12 = arith.constant 0 : index
    %10 = vector.load %arg1[%c168, %c0_12] : memref<304x128xf32, #tpu.memory_space<vmem>>, vector<64x32xf32>
    %c232 = arith.constant 232 : index
    %c0_13 = arith.constant 0 : index
    %11 = vector.load %arg1[%c232, %c0_13] : memref<304x128xf32, #tpu.memory_space<vmem>>, vector<8x64xf32>
    %c240 = arith.constant 240 : index
    %c0_14 = arith.constant 0 : index
    %12 = vector.load %arg1[%c240, %c0_14] : memref<304x128xf32, #tpu.memory_space<vmem>>, vector<64x8xf32>
    %13 = vector.extract_strided_slice %12 {offsets = [0, 0], sizes = [8, 1], strides = [1, 1]} : vector<64x8xf32> to vector<8x1xf32>
    %14 = vector.extract_strided_slice %12 {offsets = [0, 1], sizes = [64, 1], strides = [1, 1]} : vector<64x8xf32> to vector<64x1xf32>
    %15 = vector.extract_strided_slice %12 {offsets = [0, 2], sizes = [64, 1], strides = [1, 1]} : vector<64x8xf32> to vector<64x1xf32>
    %16 = vector.extract_strided_slice %12 {offsets = [0, 3], sizes = [32, 1], strides = [1, 1]} : vector<64x8xf32> to vector<32x1xf32>
    %17 = vector.extract_strided_slice %12 {offsets = [0, 4], sizes = [32, 1], strides = [1, 1]} : vector<64x8xf32> to vector<32x1xf32>
    %18 = vector.extract_strided_slice %12 {offsets = [0, 5], sizes = [64, 1], strides = [1, 1]} : vector<64x8xf32> to vector<64x1xf32>
    %19 = vector.extract_strided_slice %12 {offsets = [0, 6], sizes = [8, 1], strides = [1, 1]} : vector<64x8xf32> to vector<8x1xf32>
    %20 = vector.broadcast %3 : vector<1x128xf32> to vector<8x128xf32>
    %21 = arith.mulf %20, %0 : vector<8x128xf32>
    %22 = vector.broadcast %4 : vector<1x128xf32> to vector<8x128xf32>
    %23 = arith.mulf %22, %1 : vector<8x128xf32>
    %24 = arith.addf %21, %23 : vector<8x128xf32>
    %cst = arith.constant dense<0.000000e+00> : vector<8x128xf32>
    %25 = tpu.matmul %5, %0, %cst {dimension_numbers = #tpu.dot_dimension_numbers<[1], [0], [0], [1], [0, 0, 1, 1], [], []>} : vector<8x8xf32>, vector<8x128xf32>, vector<8x128xf32> -> vector<8x128xf32>
    %26 = vector.broadcast %13 : vector<8x1xf32> to vector<8x128xf32>
    %27 = arith.addf %25, %26 : vector<8x128xf32>
    %28 = math.tanh %27 : vector<8x128xf32>
    %c0_15 = arith.constant 0 : index
    %c0_16 = arith.constant 0 : index
    %29 = vector.load %arg3[%c0_15, %c0_16] : memref<8x128xf32, #tpu.memory_space<vmem>>, vector<8x128xf32>
    tpu.vector_store %arg3[%c0_15, %c0_16], %28 {strides = array<i32>} : memref<8x128xf32, #tpu.memory_space<vmem>>, vector<8x128xf32>,
    %cst_17 = arith.constant dense<0.000000e+00> : vector<64x128xf32>
    %30 = tpu.matmul %6, %24, %cst_17 {dimension_numbers = #tpu.dot_dimension_numbers<[1], [0], [0], [1], [0, 0, 1, 1], [], []>} : vector<64x8xf32>, vector<8x128xf32>, vector<64x128xf32> -> vector<64x128xf32>
    %31 = vector.broadcast %15 : vector<64x1xf32> to vector<64x128xf32>
    %32 = vector.broadcast %2 : vector<1x128xf32> to vector<64x128xf32>
    %33 = arith.mulf %31, %32 : vector<64x128xf32>
    %34 = arith.addf %30, %33 : vector<64x128xf32>
    %35 = vector.broadcast %14 : vector<64x1xf32> to vector<64x128xf32>
    %36 = arith.addf %34, %35 : vector<64x128xf32>
    %37 = arith.mulf %36, %36 : vector<64x128xf32>
    %38 = arith.mulf %36, %37 : vector<64x128xf32>
    %cst_18 = arith.constant 4.471500e-02 : f32
    %39 = vector.broadcast %cst_18 : f32 to vector<64x128xf32>
    %40 = arith.mulf %39, %38 : vector<64x128xf32>
    %41 = arith.addf %36, %40 : vector<64x128xf32>
    %cst_19 = arith.constant 0.797884583 : f32
    %42 = vector.broadcast %cst_19 : f32 to vector<64x128xf32>
    %43 = arith.mulf %42, %41 : vector<64x128xf32>
    %44 = math.tanh %43 : vector<64x128xf32>
    %cst_20 = arith.constant 1.000000e+00 : f32
    %45 = vector.broadcast %cst_20 : f32 to vector<64x128xf32>
    %46 = arith.addf %45, %44 : vector<64x128xf32>
    %cst_21 = arith.constant 5.000000e-01 : f32
    %47 = vector.broadcast %cst_21 : f32 to vector<64x128xf32>
    %48 = arith.mulf %47, %46 : vector<64x128xf32>
    %49 = arith.mulf %36, %48 : vector<64x128xf32>
    %cst_22 = arith.constant dense<0.000000e+00> : vector<32x128xf32>
    %50 = tpu.matmul %7, %49, %cst_22 {dimension_numbers = #tpu.dot_dimension_numbers<[1], [0], [0], [1], [0, 0, 1, 1], [], []>} : vector<32x64xf32>, vector<64x128xf32>, vector<32x128xf32> -> vector<32x128xf32>
    %51 = vector.broadcast %16 : vector<32x1xf32> to vector<32x128xf32>
    %52 = arith.addf %50, %51 : vector<32x128xf32>
    %53 = arith.mulf %52, %52 : vector<32x128xf32>
    %54 = arith.mulf %52, %53 : vector<32x128xf32>
    %cst_23 = arith.constant 4.471500e-02 : f32
    %55 = vector.broadcast %cst_23 : f32 to vector<32x128xf32>
    %56 = arith.mulf %55, %54 : vector<32x128xf32>
    %57 = arith.addf %52, %56 : vector<32x128xf32>
    %cst_24 = arith.constant 0.797884583 : f32
    %58 = vector.broadcast %cst_24 : f32 to vector<32x128xf32>
    %59 = arith.mulf %58, %57 : vector<32x128xf32>
    %60 = math.tanh %59 : vector<32x128xf32>
    %cst_25 = arith.constant 1.000000e+00 : f32
    %61 = vector.broadcast %cst_25 : f32 to vector<32x128xf32>
    %62 = arith.addf %61, %60 : vector<32x128xf32>
    %cst_26 = arith.constant 5.000000e-01 : f32
    %63 = vector.broadcast %cst_26 : f32 to vector<32x128xf32>
    %64 = arith.mulf %63, %62 : vector<32x128xf32>
    %65 = arith.mulf %52, %64 : vector<32x128xf32>
    %cst_27 = arith.constant dense<0.000000e+00> : vector<32x128xf32>
    %66 = tpu.matmul %8, %65, %cst_27 {dimension_numbers = #tpu.dot_dimension_numbers<[1], [0], [0], [1], [0, 0, 1, 1], [], []>} : vector<32x32xf32>, vector<32x128xf32>, vector<32x128xf32> -> vector<32x128xf32>
    %cst_28 = arith.constant dense<0.000000e+00> : vector<32x128xf32>
    %67 = tpu.matmul %9, %28, %cst_28 {dimension_numbers = #tpu.dot_dimension_numbers<[1], [0], [0], [1], [0, 0, 1, 1], [], []>} : vector<32x8xf32>, vector<8x128xf32>, vector<32x128xf32> -> vector<32x128xf32>
    %68 = arith.addf %66, %67 : vector<32x128xf32>
    %69 = vector.broadcast %17 : vector<32x1xf32> to vector<32x128xf32>
    %70 = arith.addf %68, %69 : vector<32x128xf32>
    %71 = arith.mulf %70, %70 : vector<32x128xf32>
    %72 = arith.mulf %70, %71 : vector<32x128xf32>
    %cst_29 = arith.constant 4.471500e-02 : f32
    %73 = vector.broadcast %cst_29 : f32 to vector<32x128xf32>
    %74 = arith.mulf %73, %72 : vector<32x128xf32>
    %75 = arith.addf %70, %74 : vector<32x128xf32>
    %cst_30 = arith.constant 0.797884583 : f32
    %76 = vector.broadcast %cst_30 : f32 to vector<32x128xf32>
    %77 = arith.mulf %76, %75 : vector<32x128xf32>
    %78 = math.tanh %77 : vector<32x128xf32>
    %cst_31 = arith.constant 1.000000e+00 : f32
    %79 = vector.broadcast %cst_31 : f32 to vector<32x128xf32>
    %80 = arith.addf %79, %78 : vector<32x128xf32>
    %cst_32 = arith.constant 5.000000e-01 : f32
    %81 = vector.broadcast %cst_32 : f32 to vector<32x128xf32>
    %82 = arith.mulf %81, %80 : vector<32x128xf32>
    %83 = arith.mulf %70, %82 : vector<32x128xf32>
    %cst_33 = arith.constant dense<0.000000e+00> : vector<64x128xf32>
    %84 = tpu.matmul %10, %83, %cst_33 {dimension_numbers = #tpu.dot_dimension_numbers<[1], [0], [0], [1], [0, 0, 1, 1], [], []>} : vector<64x32xf32>, vector<32x128xf32>, vector<64x128xf32> -> vector<64x128xf32>
    %85 = vector.broadcast %18 : vector<64x1xf32> to vector<64x128xf32>
    %86 = arith.addf %84, %85 : vector<64x128xf32>
    %87 = arith.mulf %86, %86 : vector<64x128xf32>
    %88 = arith.mulf %86, %87 : vector<64x128xf32>
    %cst_34 = arith.constant 4.471500e-02 : f32
    %89 = vector.broadcast %cst_34 : f32 to vector<64x128xf32>
    %90 = arith.mulf %89, %88 : vector<64x128xf32>
    %91 = arith.addf %86, %90 : vector<64x128xf32>
    %cst_35 = arith.constant 0.797884583 : f32
    %92 = vector.broadcast %cst_35 : f32 to vector<64x128xf32>
    %93 = arith.mulf %92, %91 : vector<64x128xf32>
    %94 = math.tanh %93 : vector<64x128xf32>
    %cst_36 = arith.constant 1.000000e+00 : f32
    %95 = vector.broadcast %cst_36 : f32 to vector<64x128xf32>
    %96 = arith.addf %95, %94 : vector<64x128xf32>
    %cst_37 = arith.constant 5.000000e-01 : f32
    %97 = vector.broadcast %cst_37 : f32 to vector<64x128xf32>
    %98 = arith.mulf %97, %96 : vector<64x128xf32>
    %99 = arith.mulf %86, %98 : vector<64x128xf32>
    %cst_38 = arith.constant dense<0.000000e+00> : vector<8x128xf32>
    %100 = tpu.matmul %11, %99, %cst_38 {dimension_numbers = #tpu.dot_dimension_numbers<[1], [0], [0], [1], [0, 0, 1, 1], [], []>} : vector<8x64xf32>, vector<64x128xf32>, vector<8x128xf32> -> vector<8x128xf32>
    %101 = vector.broadcast %19 : vector<8x1xf32> to vector<8x128xf32>
    %102 = arith.addf %100, %101 : vector<8x128xf32>
    %103 = vector.broadcast %3 : vector<1x128xf32> to vector<8x128xf32>
    %104 = arith.mulf %103, %1 : vector<8x128xf32>
    %105 = vector.broadcast %4 : vector<1x128xf32> to vector<8x128xf32>
    %106 = arith.mulf %105, %0 : vector<8x128xf32>
    %107 = arith.subf %104, %106 : vector<8x128xf32>
    %108 = arith.subf %102, %107 : vector<8x128xf32>
    %109 = arith.mulf %108, %108 : vector<8x128xf32>
    %110 = vector.shape_cast %109 : vector<8x128xf32> to vector<1x8x128xf32>
    %cst_39 = arith.constant dense<0.000000e+00> : vector<1xf32>
    %111 = vector.multi_reduction <add>, %110, %cst_39 [1, 2] : vector<1x8x128xf32> to vector<1xf32>
    %112 = vector.shape_cast %111 : vector<1xf32> to vector<1x1x1xf32>
    %113 = vector.extract %112[0, 0, 0] : f32 from vector<1x1x1xf32>
    %cst_40 = arith.constant 9.765625E-4 : f32
    %114 = arith.mulf %113, %cst_40 : f32
    %c0_41 = arith.constant 0 : index
    %c0_42 = arith.constant 0 : index
    %115 = memref.load %arg2[%c0_41, %c0_42] : memref<1x1xf32, #tpu.memory_space<smem>>
    memref.store %114, %arg2[%c0_41, %c0_42] : memref<1x1xf32, #tpu.memory_space<smem>>
    return
  }
}

</mosaic_0001>

<bundles_post_ra>
// kernel: diffusion_ae_forward.3
= control target key start
LH: loop header
LB: loop body
LE: loop exit
PB: predicated region body
PF: predicated region fallthrough
CT: control target
= control target key end

     0   :  { %vm73_vm0 = vcmask 64512   ;;  %v1464_v7 = vmov 2   ;;  %s1819_s0 = inlined_call_operand.vmem [shape: f32[19,128], index: 0, kind: input, shape index: {}]   ;;  %s1820_s1 = inlined_call_operand.vmem [shape: f32[304,128], index: 1, kind: input, shape index: {}]   ;;  %s1821_s2 = inlined_call_operand.hbm [shape: f32[1,1], index: 2, kind: output, shape index: {0}]   ;;  %s1822_s3 = inlined_call_operand.vmem [shape: f32[8,128], index: 3, kind: output, shape index: {1}]  }
   0x1   :  { %v1497_v0 = vld [vmem:[%s1819_s0] sm:$0xff]  ;;  %v15_v1 = vld [vmem:[%s1819_s0 + $0x8] sm:$0xff]  ;;  %v1186_v2 = vld [vmem:[%s1819_s0 + $0x11] ss:$0 sm:$0xff]  ;;  %1390 = vset.pattern.permute.xlu0 %v1464_v7  ;;  %1391 = vset.pattern.permute.xlu1 %v1464_v7 }
   0x2   :  { %v1187_v3 = vld [vmem:[%s1819_s0 + $0x12] ss:$0 sm:$0xff]  ;;  %v61_v4 = vmul.f32 %v1186_v2, %v1497_v0  ;;  %v1509_v5 = vmul.f32 %v1186_v2, %v15_v1  ;;  %v20_v6 = vld [vmem:[%s1820_s1 + $0x8] sm:$0xff]  ;;  %v1523_v11 = vld [vmem:[%s1820_s1 + $0x118] sm:$0xff] }
   0x3   :  { %v66_v8 = vmul.f32 %v1187_v3, %v15_v1  ;;  %1283 = vmatprep.mubr.msk.f32.mxu1 %vm73_vm0, %v20_v6  ;;  %v1518_v10 = vld [vmem:[%s1820_s1 + $0x128] sm:$0xff]  ;;  %v21_v12 = vld [vmem:[%s1820_s1 + $0x10] sm:$0xff]  ;;  %175 = vperm.xlu1 %1391, %v1523_v11   ;;  %v22_v13 = vld [vmem:[%s1820_s1 + $0x18] sm:$0xff] }
   0x4   :  { %185 = vperm.xlu0 %1390, %v1518_v10   ;;  %v1536_v14 = vld [vmem:[%s1820_s1 + $0x120] sm:$0xff] }
   0x5   :  { %v67_v9 = vadd.f32 %v66_v8, %v61_v4 }
   0x7   :  { %1281 = vmatprep.subr.mxu1 %v67_v9 }
   0x8   :  { %1282 = vmatpush3.msra.mxu1 %v67_v9 }
   0x9   :  { %9 = vsyncpa [#allocation3], 0  ;;  %1284 = vmatmul.mubr.msk.f32.vlgmr.msra.gmra.mxu1 %vm73_vm0, %v21_v12  ;;  %v23_v15 = vld [vmem:[%s1820_s1 + $0x20] sm:$0xff]  ;;  %180 = vperm.xlu0 %1390, %v1536_v14   ;;  %v24_v16 = vld [vmem:[%s1820_s1 + $0x28] sm:$0xff]  ;;  %v1465_v17 = vmov 1   ;;  %v1466_v27 = vmov 0.0  }
   0xa   :  { %1286 = vmatprep.mubr.msk.f32.mxu1 %vm73_vm0, %v22_v13  ;;  %1392 = vset.pattern.permute.xlu1 %v1465_v17  ;;  %v1550_v18 = vld [vmem:[%s1820_s1 + $0x110] sm:$0xff]  ;;  %v26_v20 = vld [vmem:[%s1820_s1 + $0x38] sm:$0xff]  ;;  %v1565_v21 = vld [vmem:[%s1820_s1 + $0x108] sm:$0xff]  ;;  %vm1467_vm1 = vmmov 0   ;;  %vm457_vm2 = vcmask 523264   ;;  %v1468_v29 = vmov 3  }
   0xb   :  { %358 = vperm.xlu1 %1392, %v1518_v10   ;;  %v25_v19 = vld [vmem:[%s1820_s1 + $0x30] sm:$0xff]  ;;  %v27_v22 = vld [vmem:[%s1820_s1 + $0x40] sm:$0xff]  ;;  %v1585_v24 = vld [vmem:[%s1820_s1 + $0xf8] sm:$0xff]  ;;  %1276 = vmatprep.subr.mxu0 %v1466_v27  ;;  %v1469_v30 = vmov 0   ;;  %vm688_vm3 = vcmask 261120   ;;  %s1473_s21 = smov [#allocation2]  }
   0xc   :  { %v1577_v23 = vld [vmem:[%s1820_s1 + $0x100] sm:$0xff]  ;;  %v1592_v25 = vld [vmem:[%s1820_s1 + $0xf0] sm:$0xff]  ;;  %1278 = vmatprep.mubr.msk.f32.mxu0 %vm1467_vm1, %v1466_v27  ;;  %1277 = vmatpush3.msra.mxu0 %v1497_v0  ;;  %v28_v28 = vld [vmem:[%s1820_s1 + $0x48] sm:$0xff] }
   0xd   :  { %1287 = vmatmul.mubr.msk.f32.gmra.mxu1 %vm73_vm0, %v23_v15  ;;  %170 = vperm.xlu0 %1390, %v1550_v18   ;;  %v19_v26 = vld [vmem:[%s1820_s1] sm:$0xff]  ;;  %v1189_v43 = vld [vmem:[%s1819_s0 + $0x10] ss:$0 sm:$0xff] }
   0xe   :  { %1289 = vmatprep.mubr.msk.f32.mxu1 %vm73_vm0, %v24_v16  ;;  %1279 = vmatmul.mubr.msk.f32.vlgmr.msra.gmra.mxu0 %vm73_vm0, %v19_v26 }
   0xf   :  { %354 = vperm.xlu1 %1392, %v1536_v14   ;;  %1311 = vmatprep.mubr.msk.f32.mxu0 %vm457_vm2, %v28_v28 }
  0x11   :  { %1290 = vmatmul.mubr.msk.f32.gmra.mxu1 %vm73_vm0, %v25_v19  ;;  %165 = vperm.xlu0 %1390, %v1565_v21  }
  0x12   :  { %1292 = vmatprep.mubr.msk.f32.mxu1 %vm73_vm0, %v26_v20 }
  0x13   :  { %350 = vperm.xlu1 %1392, %v1523_v11  }
  0x15   :  { %1293 = vmatmul.mubr.msk.f32.gmra.mxu1 %vm73_vm0, %v27_v22  ;;  %160 = vperm.xlu0 %1390, %v1577_v23  }
  0x17   :  { %346 = vperm.xlu1 %1392, %v1550_v18  }
  0x19   :  { %155 = vperm.xlu0 %1390, %v1585_v24  }
  0x1b   :  { %342 = vperm.xlu1 %1392, %v1565_v21  }
  0x1d   :  { %150 = vperm.xlu0 %1390, %v1592_v25  }
  0x1f   :  { %338 = vperm.xlu1 %1392, %v1577_v23  }
  0x21   :  { %1393 = vset.pattern.permute.xlu0 %v1465_v17 }
  0x22   :  { %334 = vperm.xlu0 %1393, %v1585_v24  }
  0x23   :  { %330 = vperm.xlu1 %1392, %v1592_v25  }
  0x26   :  { %1395 = vset.pattern.permute.xlu0 %v1468_v29 }
  0x27   :  { %1394 = vset.pattern.permute.xlu1 %v1468_v29  ;;  %450 = vperm.xlu0 %1395, %v1577_v23  }
  0x28   :  { %454 = vperm.xlu1 %1394, %v1565_v21  }
  0x2b   :  { %1396 = vset.pattern.permute.xlu0 %v1469_v30 }
  0x2c   :  { %446 = vperm.xlu1 %1394, %v1585_v24   ;;  %70 = vperm.xlu0 %1396, %v1592_v25  }
  0x30   :  { %442 = vperm.xlu1 %1394, %v1592_v25  }
  0x7e   :  { %v176_v32 = vpop.permute.xlu1 %175 }
  0x7f   :  { %v186_v31 = vpop.permute.xlu0 %185  ;;  %v197_v60 = vmul.f32 %v1189_v43, %v176_v32 }
  0x80   :  { %v199_v8 = vmul.f32 %v1189_v43, %v186_v31 }
  0x84   :  { %v181_v33 = vpop.permute.xlu0 %180 }
  0x85   :  { %v198_v17 = vmul.f32 %v1189_v43, %v181_v33 }
  0x86   :  { %v359_v34 = vpop.permute.xlu1 %358 }
  0x88   :  { %v171_v35 = vpop.permute.xlu0 %170 }
  0x89   :  { %v196_v2 = vmul.f32 %v1189_v43, %v171_v35 }
  0x8a   :  { %v355_v36 = vpop.permute.xlu1 %354 }
  0x8c   :  { %v166_v37 = vpop.permute.xlu0 %165 }
  0x8d   :  { %v195_v49 = vmul.f32 %v1189_v43, %v166_v37 }
  0x8e   :  { %v351_v38 = vpop.permute.xlu1 %350 }
  0x90   :  { %v161_v39 = vpop.permute.xlu0 %160 }
  0x91   :  { %v194_v51 = vmul.f32 %v1189_v43, %v161_v39 }
  0x92   :  { %v347_v40 = vpop.permute.xlu1 %346 }
  0x94   :  { %v156_v41 = vpop.permute.xlu0 %155 }
  0x95   :  { %v193_v46 = vmul.f32 %v1189_v43, %v156_v41 }
  0x96   :  { %v343_v42 = vpop.permute.xlu1 %342 }
  0x98   :  { %v151_v44 = vpop.permute.xlu0 %150 }
  0x99   :  { %v192_v52 = vmul.f32 %v1189_v43, %v151_v44 }
  0x9a   :  { %v339_v47 = vpop.permute.xlu1 %338 }
  0x9d   :  { %v335_v55 = vpop.permute.xlu0 %334 }
  0x9e   :  { %v331_v61 = vpop.permute.xlu1 %330 }
  0xc9   :  { %v1285_v45 = vpop.f32.mrf.mxu1 }
  0xca   :  { %v296_v53 = vadd.f32 %v1285_v45, %v193_v46 }
  0xcb   :  { %v290_v48 = vpop.f32.mrf.mxu1 }
  0xcc   :  { %v291_v57 = vadd.f32 %v290_v48, %v192_v52  ;;  %v1621_v63 = vadd.f32 %v335_v55, %v296_v53 }
  0xcd   :  { %v1288_v50 = vpop.f32.mrf.mxu1 }
  0xce   :  { %v306_v54 = vadd.f32 %v1288_v50, %v195_v49  ;;  %v1627_v6 = vadd.f32 %v331_v61, %v291_v57  ;;  %v370_v15 = vmul.f32 %v1621_v63, %v1621_v63 }
  0xcf   :  { %v300_v56 = vpop.f32.mrf.mxu1 }
  0xd0   :  { %v1619_v58 = vadd.f32 %v343_v42, %v306_v54  ;;  %v301_v59 = vadd.f32 %v300_v56, %v194_v51  ;;  %v369_v28 = vmul.f32 %v1627_v6, %v1627_v6  ;;  %v378_v33 = vmul.f32 %v370_v15, %v1621_v63 }
  0xd1   :  { %v1291_v62 = vpop.f32.mrf.mxu1 }
  0xd2   :  { %v372_v0 = vmul.f32 %v1619_v58, %v1619_v58  ;;  %v1625_v1 = vadd.f32 %v339_v47, %v301_v59  ;;  %v316_v3 = vadd.f32 %v1291_v62, %v197_v60  ;;  %v377_v42 = vmul.f32 %v369_v28, %v1627_v6 }
  0xd3   :  { %v310_v4 = vpop.f32.mrf.mxu1  ;;  %v386_v48 = vmul.f32 0.044715, %v378_v33 }
  0xd4   :  { %v371_v7 = vmul.f32 %v1625_v1, %v1625_v1  ;;  %v1631_v9 = vadd.f32 %v351_v38, %v316_v3  ;;  %v311_v12 = vadd.f32 %v310_v4, %v196_v2  ;;  %v380_v16 = vmul.f32 %v372_v0, %v1619_v58 }
  0xd5   :  { %v1294_v13 = vpop.f32.mrf.mxu1  ;;  %v385_v53 = vmul.f32 0.044715, %v377_v42  ;;  %v394_v59 = vadd.f32 %v386_v48, %v1621_v63 }
  0xd6   :  { %v374_v19 = vmul.f32 %v1631_v9, %v1631_v9  ;;  %v1638_v20 = vadd.f32 %v347_v40, %v311_v12  ;;  %v326_v22 = vadd.f32 %v1294_v13, %v199_v8  ;;  %v379_v29 = vmul.f32 %v371_v7, %v1625_v1 }
  0xd7   :  { %v320_v26 = vpop.f32.mrf.mxu1  ;;  %v388_v37 = vmul.f32 0.044715, %v380_v16  ;;  %v393_v62 = vadd.f32 %v385_v53, %v1627_v6  ;;  %v402_v3 = vmul.f32 0.7978846, %v394_v59  ;;  %v1470_v59 = vmov 4  }
  0xd8   :  { %v382_v30 = vmul.f32 %v374_v19, %v1631_v9  ;;  %v373_v31 = vmul.f32 %v1638_v20, %v1638_v20  ;;  %v368_v32 = vadd.f32 %v359_v34, %v326_v22  ;;  %v321_v35 = vadd.f32 %v320_v26, %v198_v17  ;;  %1397 = vset.pattern.permute.xlu1 %v1470_v59 }
  0xd9   :  { %v387_v43 = vmul.f32 0.044715, %v379_v29  ;;  %v396_v34 = vadd.f32 %v388_v37, %v1619_v58  ;;  %v401_v4 = vmul.f32 0.7978846, %v393_v62  ;;  %1398 = vset.pattern.permute.xlu0 %v1470_v59  ;;  %799 = vperm.xlu1 %1397, %v1565_v21  }
  0xda   :  { %v390_v38 = vmul.f32 0.044715, %v382_v30  ;;  %v381_v39 = vmul.f32 %v373_v31, %v1638_v20  ;;  %v376_v40 = vmul.f32 %v368_v32, %v368_v32  ;;  %v367_v41 = vadd.f32 %v355_v36, %v321_v35  ;;  %791 = vperm.xlu0 %1398, %v1585_v24  }
  0xdb   :  { %v395_v54 = vadd.f32 %v387_v43, %v1625_v1  ;;  %v404_v57 = vmul.f32 0.7978846, %v396_v34 }
  0xdc   :  { %v398_v44 = vadd.f32 %v390_v38, %v1631_v9  ;;  %v389_v45 = vmul.f32 0.044715, %v381_v39  ;;  %v384_v46 = vmul.f32 %v376_v40, %v368_v32  ;;  %v375_v47 = vmul.f32 %v367_v41, %v367_v41 }
  0xdd   :  { %v403_v2 = vmul.f32 0.7978846, %v395_v54  ;;  %v36_v54 = vld [vmem:[%s1820_s1 + $0x88] sm:$0xff]  ;;  %795 = vperm.xlu1 %1397, %v1577_v23  }
  0xde   :  { %v397_v49 = vadd.f32 %v389_v45, %v1638_v20  ;;  %v392_v50 = vmul.f32 0.044715, %v384_v46  ;;  %v383_v51 = vmul.f32 %v375_v47, %v367_v41  ;;  %v406_v52 = vmul.f32 0.7978846, %v398_v44  ;;  %1319 = vmatprep.mubr.msk.f32.mxu1 %vm73_vm0, %v36_v54  ;;  %v34_v54 = vld [vmem:[%s1820_s1 + $0x78] sm:$0xff] }
  0xe0   :  { %v400_v36 = vadd.f32 %v392_v50, %v368_v32  ;;  %v391_v55 = vmul.f32 0.044715, %v383_v51  ;;  %v405_v56 = vmul.f32 0.7978846, %v397_v49  ;;  %1402 = vtanh.f32 %v406_v52  ;;  %v29_v49 = vld [vmem:[%s1820_s1 + $0x50] sm:$0xff]  ;;  %v143_v50 = vpop.f32.mrf.mxu0 }
  0xe1   :  { %787 = vperm.xlu1 %1397, %v1592_v25  }
  0xe2   :  { %v399_v60 = vadd.f32 %v391_v55, %v367_v41  ;;  %v408_v61 = vmul.f32 0.7978846, %v400_v36  ;;  %1404 = vtanh.f32 %v405_v56  ;;  %v1280_v52 = vpop.f32.mrf.mxu0  ;;  %v37_v36 = vld [vmem:[%s1820_s1 + $0x90] sm:$0xff]  ;;  %v32_v55 = vld [vmem:[%s1820_s1 + $0x68] sm:$0xff]  ;;  %v38_v56 = vld [vmem:[%s1820_s1 + $0x98] sm:$0xff] }
  0xe4   :  { %1406 = vtanh.f32 %v408_v61  ;;  %v407_v0 = vmul.f32 0.7978846, %v399_v60  ;;  %v455_v60 = vpop.permute.xlu1 %454 }
  0xe5   :  { %1408 = vtanh.f32 %v404_v57  ;;  %v39_v57 = vld [vmem:[%s1820_s1 + $0xa0] sm:$0xff] }
  0xe6   :  { %1410 = vtanh.f32 %v407_v0 }
  0xe7   :  { %1412 = vtanh.f32 %v403_v2 }
  0xe8   :  { %1414 = vtanh.f32 %v402_v3  ;;  %v447_v61 = vpop.permute.xlu1 %446 }
  0xe9   :  { %1416 = vtanh.f32 %v401_v4 }
  0xec   :  { %v443_v0 = vpop.permute.xlu1 %442 }
  0xed   :  { %v1403_v7 = vpop.eup %1402 }
  0xee   :  { %v422_v16 = vadd.f32 1.0, %v1403_v7 }
  0xef   :  { %v1405_v8 = vpop.eup %1404 }
  0xf0   :  { %v421_v26 = vadd.f32 1.0, %v1405_v8  ;;  %v430_v31 = vmul.f32 0.5, %v422_v16 }
  0xf1   :  { %v1407_v12 = vpop.eup %1406 }
  0xf2   :  { %v1409_v13 = vpop.eup %1408  ;;  %v424_v15 = vadd.f32 1.0, %v1407_v12  ;;  %v429_v38 = vmul.f32 0.5, %v421_v26  ;;  %v438_v42 = vmul.f32 %v430_v31, %v1631_v9 }
  0xf3   :  { %v1411_v17 = vpop.eup %1410  ;;  %v420_v35 = vadd.f32 1.0, %v1409_v13 }
  0xf4   :  { %v432_v19 = vmul.f32 0.5, %v424_v15  ;;  %v423_v22 = vadd.f32 1.0, %v1411_v17  ;;  %v1413_v28 = vpop.eup %1412  ;;  %v437_v45 = vmul.f32 %v429_v38, %v1638_v20 }
  0xf5   :  { %v1415_v33 = vpop.eup %1414  ;;  %v419_v39 = vadd.f32 1.0, %v1413_v28  ;;  %v428_v43 = vmul.f32 0.5, %v420_v35 }
  0xf6   :  { %v440_v29 = vmul.f32 %v432_v19, %v368_v32  ;;  %v431_v30 = vmul.f32 0.5, %v423_v22  ;;  %v1417_v40 = vpop.eup %1416  ;;  %v418_v44 = vadd.f32 1.0, %v1415_v33 }
  0xf7   :  { %v427_v32 = vmul.f32 0.5, %v419_v39  ;;  %v417_v46 = vadd.f32 1.0, %v1417_v40  ;;  %v436_v47 = vmul.f32 %v428_v43, %v1619_v58  ;;  %v30_v58 = vld [vmem:[%s1820_s1 + $0x58] sm:$0xff] }
  0xf8   :  { %1295 = vmatprep.subr.mxu0 %v440_v29  ;;  %v439_v37 = vmul.f32 %v431_v30, %v367_v41  ;;  %v426_v41 = vmul.f32 0.5, %v418_v44 }
  0xf9   :  { %1296 = vmatpush3.msra.mxu0 %v440_v29  ;;  %v435_v48 = vmul.f32 %v427_v32, %v1625_v1  ;;  %v425_v34 = vmul.f32 0.5, %v417_v46  ;;  %v451_v1 = vpop.permute.xlu0 %450 }
  0xfa   :  { %1297 = vmatprep.subr.mxu0 %v439_v37  ;;  %v434_v9 = vmul.f32 %v426_v41, %v1621_v63  ;;  %v31_v63 = vld [vmem:[%s1820_s1 + $0x60] sm:$0xff] }
  0xfb   :  { %1298 = vmatpush3.msra.mxu0 %v439_v37  ;;  %v433_v20 = vmul.f32 %v425_v34, %v1627_v6 }
  0xfc   :  { %1299 = vmatprep.subr.mxu0 %v438_v42 }
  0xfd   :  { %1300 = vmatpush3.msra.mxu0 %v438_v42  ;;  %v71_v6 = vpop.permute.xlu0 %70 }
  0xfe   :  { %1301 = vmatprep.subr.mxu0 %v437_v45  ;;  %v144_v51 = vadd.f32 %v143_v50, %v71_v6 }
  0xff   :  { %1302 = vmatpush3.msra.mxu0 %v437_v45 }
 0x100   :  { %1303 = vmatprep.subr.mxu0 %v436_v47  ;;  %1418 = vtanh.f32 %v144_v51 }
 0x101   :  { %1304 = vmatpush3.msra.mxu0 %v436_v47 }
 0x102   :  { %1305 = vmatprep.subr.mxu0 %v435_v48 }
 0x103   :  { %1306 = vmatpush3.msra.mxu0 %v435_v48 }
 0x104   :  { %1307 = vmatprep.subr.mxu0 %v434_v9 }
 0x105   :  { %1308 = vmatpush3.msra.mxu0 %v434_v9 }
 0x106   :  { %1309 = vmatprep.subr.mxu0 %v433_v20 }
 0x107   :  { %1310 = vmatpush3.msra.mxu0 %v433_v20 }
 0x108   :  { %1312 = vmatmul.mubr.msk.f32.vlgmr.msra.gmra.mxu0 %vm457_vm2, %v29_v49 }
 0x109   :  { %1314 = vmatprep.mubr.msk.f32.mxu0 %vm457_vm2, %v30_v58 }
 0x10c   :  { %1315 = vmatmul.mubr.msk.f32.gmra.mxu0 %vm457_vm2, %v31_v63 }
 0x10d   :  { %v1419_v53 = vpop.eup %1418  ;;  %1333 = vmatprep.mubr.msk.f32.mxu0 %vm688_vm3, %v32_v55  ;;  %v40_v55 = vld [vmem:[%s1820_s1 + $0xa8] sm:$0xff] }
 0x10e   :  { %148 = vst [vmem:[%s1822_s3] sm:$0xff] %v1419_v53  ;;  %1317 = vmatprep.subr.mxu1 %v1419_v53 }
 0x10f   :  { %1318 = vmatpush3.msra.mxu1 %v1419_v53  ;;  %v33_v53 = vld [vmem:[%s1820_s1 + $0x70] sm:$0xff] }
 0x110   :  { %1320 = vmatmul.mubr.msk.f32.vlgmr.msra.gmra.mxu1 %vm73_vm0, %v37_v36  ;;  %v35_v36 = vld [vmem:[%s1820_s1 + $0x80] sm:$0xff] }
 0x111   :  { %1322 = vmatprep.mubr.msk.f32.mxu1 %vm73_vm0, %v38_v56  ;;  %v1471_v56 = vmov 5  }
 0x112   :  { %1399 = vset.pattern.permute.xlu1 %v1471_v56  ;;  %1400 = vset.pattern.permute.xlu0 %v1471_v56  ;;  %v45_v56 = vld [vmem:[%s1820_s1 + $0xd0] sm:$0xff] }
 0x113   :  { %871 = vperm.xlu1 %1399, %v1518_v10   ;;  %867 = vperm.xlu0 %1400, %v1536_v14  }
 0x114   :  { %1323 = vmatmul.mubr.msk.f32.gmra.mxu1 %vm73_vm0, %v39_v57 }
 0x115   :  { %1347 = vmatprep.mubr.msk.f32.mxu1 %vm688_vm3, %v40_v55  ;;  %v44_v55 = vld [vmem:[%s1820_s1 + $0xc8] sm:$0xff] }
 0x117   :  { %863 = vperm.xlu1 %1399, %v1523_v11   ;;  %855 = vperm.xlu0 %1400, %v1565_v21  }
 0x11b   :  { %859 = vperm.xlu1 %1399, %v1550_v18   ;;  %847 = vperm.xlu0 %1400, %v1585_v24  }
 0x11f   :  { %851 = vperm.xlu1 %1399, %v1577_v23  }
 0x123   :  { %843 = vperm.xlu1 %1399, %v1592_v25  }
 0x154   :  { %v800_v57 = vpop.permute.xlu1 %799 }
 0x155   :  { %v792_v10 = vpop.permute.xlu0 %791 }
 0x1c8   :  { %v1313_v62 = vpop.f32.mrf.mxu0 }
 0x1c9   :  { %v542_v2 = vadd.f32 %v1313_v62, %v447_v61 }
 0x1ca   :  { %v536_v3 = vpop.f32.mrf.mxu0 }
 0x1cb   :  { %v556_v4 = vmul.f32 %v542_v2, %v542_v2  ;;  %v537_v7 = vadd.f32 %v536_v3, %v443_v0 }
 0x1cc   :  { %v1316_v8 = vpop.f32.mrf.mxu0 }
 0x1cd   :  { %v560_v12 = vmul.f32 %v556_v4, %v542_v2  ;;  %v555_v13 = vmul.f32 %v537_v7, %v537_v7  ;;  %v552_v15 = vadd.f32 %v1316_v8, %v455_v60  ;;  %v796_v60 = vpop.permute.xlu1 %795 }
 0x1ce   :  { %v546_v16 = vpop.f32.mrf.mxu0 }
 0x1cf   :  { %v564_v17 = vmul.f32 0.044715, %v560_v12  ;;  %v559_v19 = vmul.f32 %v555_v13, %v537_v7  ;;  %v558_v22 = vmul.f32 %v552_v15, %v552_v15  ;;  %v547_v26 = vadd.f32 %v546_v16, %v451_v1 }
 0x1d0   :  { %v1321_v59 = vpop.f32.mrf.mxu1 }
 0x1d1   :  { %v568_v28 = vadd.f32 %v564_v17, %v542_v2  ;;  %v563_v29 = vmul.f32 0.044715, %v559_v19  ;;  %v562_v30 = vmul.f32 %v558_v22, %v552_v15  ;;  %v557_v31 = vmul.f32 %v547_v26, %v547_v26  ;;  %v788_v11 = vpop.permute.xlu1 %787 }
 0x1d2   :  { %v669_v61 = vpop.f32.mrf.mxu1 }
 0x1d3   :  { %v572_v35 = vmul.f32 0.7978846, %v568_v28  ;;  %v567_v33 = vadd.f32 %v563_v29, %v537_v7  ;;  %v566_v37 = vmul.f32 0.044715, %v562_v30  ;;  %v561_v38 = vmul.f32 %v557_v31, %v547_v26 }
 0x1d4   :  { %v1324_v14 = vpop.f32.mrf.mxu1 }
 0x1d5   :  { %v571_v39 = vmul.f32 0.7978846, %v567_v33  ;;  %v570_v40 = vadd.f32 %v566_v37, %v552_v15  ;;  %v565_v42 = vmul.f32 0.044715, %v561_v38  ;;  %1420 = vtanh.f32 %v572_v35 }
 0x1d6   :  { %v679_v8 = vpop.f32.mrf.mxu1 }
 0x1d7   :  { %v574_v43 = vmul.f32 0.7978846, %v570_v40  ;;  %v569_v44 = vadd.f32 %v565_v42, %v547_v26  ;;  %1422 = vtanh.f32 %v571_v39 }
 0x1d9   :  { %1424 = vtanh.f32 %v574_v43  ;;  %v573_v45 = vmul.f32 0.7978846, %v569_v44 }
 0x1db   :  { %1426 = vtanh.f32 %v573_v45 }
 0x1e2   :  { %v1421_v32 = vpop.eup %1420 }
 0x1e3   :  { %v580_v48 = vadd.f32 1.0, %v1421_v32 }
 0x1e4   :  { %v1423_v46 = vpop.eup %1422 }
 0x1e5   :  { %v579_v49 = vadd.f32 1.0, %v1423_v46  ;;  %v584_v1 = vmul.f32 0.5, %v580_v48 }
 0x1e6   :  { %v1425_v47 = vpop.eup %1424 }
 0x1e7   :  { %v582_v41 = vadd.f32 1.0, %v1425_v47  ;;  %v583_v50 = vmul.f32 0.5, %v579_v49  ;;  %v588_v51 = vmul.f32 %v584_v1, %v542_v2 }
 0x1e8   :  { %v1427_v34 = vpop.eup %1426 }
 0x1e9   :  { %v586_v9 = vmul.f32 0.5, %v582_v41  ;;  %v581_v20 = vadd.f32 1.0, %v1427_v34  ;;  %v587_v52 = vmul.f32 %v583_v50, %v537_v7 }
 0x1eb   :  { %v590_v58 = vmul.f32 %v586_v9, %v552_v15  ;;  %v585_v63 = vmul.f32 0.5, %v581_v20 }
 0x1ed   :  { %1325 = vmatprep.subr.mxu0 %v590_v58  ;;  %v589_v6 = vmul.f32 %v585_v63, %v547_v26 }
 0x1ee   :  { %1326 = vmatpush3.msra.mxu0 %v590_v58 }
 0x1ef   :  { %1327 = vmatprep.subr.mxu0 %v589_v6 }
 0x1f0   :  { %1328 = vmatpush3.msra.mxu0 %v589_v6 }
 0x1f1   :  { %1329 = vmatprep.subr.mxu0 %v588_v51 }
 0x1f2   :  { %1330 = vmatpush3.msra.mxu0 %v588_v51 }
 0x1f3   :  { %1331 = vmatprep.subr.mxu0 %v587_v52 }
 0x1f4   :  { %1332 = vmatpush3.msra.mxu0 %v587_v52 }
 0x1f5   :  { %1334 = vmatmul.mubr.msk.f32.vlgmr.msra.gmra.mxu0 %vm688_vm3, %v33_v53  ;;  %1359 = vmatprep.subr.mxu0 %v1466_v27  ;;  %v41_v53 = vld [vmem:[%s1820_s1 + $0xb0] sm:$0xff] }
 0x1f6   :  { %1336 = vmatprep.mubr.msk.f32.mxu0 %vm688_vm3, %v34_v54  ;;  %v42_v54 = vld [vmem:[%s1820_s1 + $0xb8] sm:$0xff] }
 0x1f9   :  { %1337 = vmatmul.mubr.msk.f32.gmra.mxu0 %vm688_vm3, %v35_v36  ;;  %v43_v36 = vld [vmem:[%s1820_s1 + $0xc0] sm:$0xff] }
 0x1fa   :  { %1375 = vmatprep.mubr.msk.f32.mxu0 %vm1467_vm1, %v1466_v27 }
 0x2b5   :  { %v1335_v62 = vpop.f32.mrf.mxu0 }
 0x2b6   :  { %v773_v0 = vadd.f32 %v1335_v62, %v1321_v59  ;;  %v47_v59 = vld [vmem:[%s1820_s1 + $0xe0] sm:$0xff] }
 0x2b7   :  { %v767_v2 = vpop.f32.mrf.mxu0 }
 0x2b8   :  { %v803_v3 = vadd.f32 %v792_v10, %v773_v0  ;;  %v768_v21 = vadd.f32 %v767_v2, %v669_v61  ;;  %v872_v61 = vpop.permute.xlu1 %871  ;;  %v868_v10 = vpop.permute.xlu0 %867 }
 0x2b9   :  { %v1338_v4 = vpop.f32.mrf.mxu0 }
 0x2ba   :  { %v807_v18 = vmul.f32 %v803_v3, %v803_v3  ;;  %v802_v7 = vadd.f32 %v788_v11, %v768_v21  ;;  %v783_v24 = vadd.f32 %v1338_v4, %v1324_v14 }
 0x2bb   :  { %v777_v23 = vpop.f32.mrf.mxu0 }
 0x2bc   :  { %v811_v12 = vmul.f32 %v807_v18, %v803_v3  ;;  %v806_v13 = vmul.f32 %v802_v7, %v802_v7  ;;  %v805_v15 = vadd.f32 %v800_v57, %v783_v24  ;;  %v778_v16 = vadd.f32 %v777_v23, %v679_v8  ;;  %v46_v57 = vld [vmem:[%s1820_s1 + $0xd8] sm:$0xff]  ;;  %v864_v62 = vpop.permute.xlu1 %863  ;;  %v856_v14 = vpop.permute.xlu0 %855 }
 0x2be   :  { %v815_v17 = vmul.f32 0.044715, %v811_v12  ;;  %v810_v19 = vmul.f32 %v806_v13, %v802_v7  ;;  %v809_v22 = vmul.f32 %v805_v15, %v805_v15  ;;  %v804_v26 = vadd.f32 %v796_v60, %v778_v16 }
 0x2bf   :  { %v1472_v60 = vmov 6  }
 0x2c0   :  { %v819_v28 = vadd.f32 %v815_v17, %v803_v3  ;;  %v814_v29 = vmul.f32 0.044715, %v810_v19  ;;  %v813_v30 = vmul.f32 %v809_v22, %v805_v15  ;;  %v808_v31 = vmul.f32 %v804_v26, %v804_v26  ;;  %1401 = vset.pattern.permute.xlu0 %v1472_v60  ;;  %v860_v0 = vpop.permute.xlu1 %859  ;;  %v848_v21 = vpop.permute.xlu0 %847 }
 0x2c1   :  { %1076 = vperm.xlu0 %1401, %v1592_v25  }
 0x2c2   :  { %v823_v35 = vmul.f32 0.7978846, %v819_v28  ;;  %v818_v33 = vadd.f32 %v814_v29, %v802_v7  ;;  %v817_v37 = vmul.f32 0.044715, %v813_v30  ;;  %v812_v38 = vmul.f32 %v808_v31, %v804_v26 }
 0x2c4   :  { %v822_v39 = vmul.f32 0.7978846, %v818_v33  ;;  %v821_v40 = vadd.f32 %v817_v37, %v805_v15  ;;  %v816_v42 = vmul.f32 0.044715, %v812_v38  ;;  %1428 = vtanh.f32 %v823_v35  ;;  %v852_v2 = vpop.permute.xlu1 %851 }
 0x2c6   :  { %v820_v43 = vadd.f32 %v816_v42, %v804_v26  ;;  %v825_v44 = vmul.f32 0.7978846, %v821_v40  ;;  %1430 = vtanh.f32 %v822_v39 }
 0x2c8   :  { %1432 = vtanh.f32 %v825_v44  ;;  %v824_v45 = vmul.f32 0.7978846, %v820_v43 }
 0x2ca   :  { %1434 = vtanh.f32 %v824_v45 }
 0x2d1   :  { %v1429_v32 = vpop.eup %1428 }
 0x2d2   :  { %v831_v48 = vadd.f32 1.0, %v1429_v32 }
 0x2d3   :  { %v1431_v46 = vpop.eup %1430 }
 0x2d4   :  { %v830_v49 = vadd.f32 1.0, %v1431_v46  ;;  %v835_v1 = vmul.f32 0.5, %v831_v48 }
 0x2d5   :  { %v1433_v47 = vpop.eup %1432 }
 0x2d6   :  { %v833_v41 = vadd.f32 1.0, %v1433_v47  ;;  %v834_v50 = vmul.f32 0.5, %v830_v49  ;;  %v839_v51 = vmul.f32 %v835_v1, %v803_v3 }
 0x2d7   :  { %v1435_v34 = vpop.eup %1434 }
 0x2d8   :  { %v837_v9 = vmul.f32 0.5, %v833_v41  ;;  %v832_v20 = vadd.f32 1.0, %v1435_v34  ;;  %v838_v52 = vmul.f32 %v834_v50, %v802_v7  ;;  %v844_v7 = vpop.permute.xlu1 %843 }
 0x2da   :  { %v841_v58 = vmul.f32 %v837_v9, %v805_v15  ;;  %v836_v63 = vmul.f32 0.5, %v832_v20 }
 0x2dc   :  { %1339 = vmatprep.subr.mxu1 %v841_v58  ;;  %v840_v6 = vmul.f32 %v836_v63, %v804_v26 }
 0x2dd   :  { %1340 = vmatpush3.msra.mxu1 %v841_v58 }
 0x2de   :  { %1341 = vmatprep.subr.mxu1 %v840_v6 }
 0x2df   :  { %1342 = vmatpush3.msra.mxu1 %v840_v6 }
 0x2e0   :  { %1343 = vmatprep.subr.mxu1 %v839_v51 }
 0x2e1   :  { %1344 = vmatpush3.msra.mxu1 %v839_v51 }
 0x2e2   :  { %1345 = vmatprep.subr.mxu1 %v838_v52 }
 0x2e3   :  { %1346 = vmatpush3.msra.mxu1 %v838_v52 }
 0x2e4   :  { %1348 = vmatmul.mubr.msk.f32.vlgmr.msra.gmra.mxu1 %vm688_vm3, %v41_v53 }
 0x2e5   :  { %1350 = vmatprep.mubr.msk.f32.mxu1 %vm688_vm3, %v42_v54 }
 0x2e8   :  { %1351 = vmatmul.mubr.msk.f32.gmra.mxu1 %vm688_vm3, %v43_v36 }
 0x2e9   :  { %1353 = vmatprep.mubr.msk.f32.mxu1 %vm688_vm3, %v44_v55 }
 0x2ec   :  { %1354 = vmatmul.mubr.msk.f32.gmra.mxu1 %vm688_vm3, %v45_v56 }
 0x2ed   :  { %1356 = vmatprep.mubr.msk.f32.mxu1 %vm688_vm3, %v46_v57 }
 0x2f0   :  { %1357 = vmatmul.mubr.msk.f32.gmra.mxu1 %vm688_vm3, %v47_v59 }
 0x3a4   :  { %v1349_v11 = vpop.f32.mrf.mxu1 }
 0x3a5   :  { %v1758_v8 = vadd.f32 %v1349_v11, %v848_v21 }
 0x3a6   :  { %v964_v3 = vpop.f32.mrf.mxu1 }
 0x3a7   :  { %v1764_v13 = vadd.f32 %v964_v3, %v844_v7  ;;  %v1004_v19 = vmul.f32 %v1758_v8, %v1758_v8 }
 0x3a8   :  { %v1352_v4 = vpop.f32.mrf.mxu1 }
 0x3a9   :  { %v1756_v18 = vadd.f32 %v1352_v4, %v856_v14  ;;  %v1003_v30 = vmul.f32 %v1764_v13, %v1764_v13  ;;  %v1012_v39 = vmul.f32 %v1004_v19, %v1758_v8 }
 0x3aa   :  { %v974_v24 = vpop.f32.mrf.mxu1 }
 0x3ab   :  { %v1760_v23 = vadd.f32 %v974_v24, %v852_v2  ;;  %v1006_v25 = vmul.f32 %v1756_v18, %v1756_v18  ;;  %v1011_v32 = vmul.f32 %v1003_v30, %v1764_v13  ;;  %v1020_v9 = vmul.f32 0.044715, %v1012_v39 }
 0x3ac   :  { %v1355_v12 = vpop.f32.mrf.mxu1 }
 0x3ad   :  { %v1005_v15 = vmul.f32 %v1760_v23, %v1760_v23  ;;  %v1768_v16 = vadd.f32 %v1355_v12, %v864_v62  ;;  %v1014_v22 = vmul.f32 %v1006_v25, %v1756_v18  ;;  %v1019_v50 = vmul.f32 0.044715, %v1011_v32 }
 0x3ae   :  { %v984_v17 = vpop.f32.mrf.mxu1  ;;  %v1028_v36 = vadd.f32 %v1020_v9, %v1758_v8 }
 0x3af   :  { %v1008_v26 = vmul.f32 %v1768_v16, %v1768_v16  ;;  %v1775_v28 = vadd.f32 %v984_v17, %v860_v0  ;;  %v1013_v31 = vmul.f32 %v1005_v15, %v1760_v23  ;;  %v1022_v42 = vmul.f32 0.044715, %v1014_v22 }
 0x3b0   :  { %v1358_v29 = vpop.f32.mrf.mxu1  ;;  %v1027_v59 = vadd.f32 %v1019_v50, %v1764_v13 }
 0x3b1   :  { %v1016_v35 = vmul.f32 %v1008_v26, %v1768_v16  ;;  %v1007_v33 = vmul.f32 %v1775_v28, %v1775_v28  ;;  %v1000_v37 = vadd.f32 %v1358_v29, %v872_v61  ;;  %v1021_v47 = vmul.f32 0.044715, %v1013_v31 }
 0x3b2   :  { %v994_v38 = vpop.f32.mrf.mxu1  ;;  %v1030_v49 = vadd.f32 %v1022_v42, %v1756_v18  ;;  %v1036_v61 = vmul.f32 0.7978846, %v1028_v36  ;;  %v1035_v62 = vmul.f32 0.7978846, %v1027_v59 }
 0x3b3   :  { %v995_v40 = vadd.f32 %v994_v38, %v868_v10  ;;  %v1024_v43 = vmul.f32 0.044715, %v1016_v35  ;;  %v1015_v44 = vmul.f32 %v1007_v33, %v1775_v28  ;;  %v1010_v45 = vmul.f32 %v1000_v37, %v1000_v37 }
 0x3b4   :  { %v1029_v51 = vadd.f32 %v1021_v47, %v1760_v23  ;;  %v1038_v55 = vmul.f32 0.7978846, %v1030_v49 }
 0x3b5   :  { %v1009_v46 = vmul.f32 %v995_v40, %v995_v40  ;;  %v1032_v41 = vadd.f32 %v1024_v43, %v1768_v16  ;;  %v1023_v48 = vmul.f32 0.044715, %v1015_v44  ;;  %v1018_v34 = vmul.f32 %v1010_v45, %v1000_v37 }
 0x3b6   :  { %v1037_v60 = vmul.f32 0.7978846, %v1029_v51 }
 0x3b7   :  { %v1017_v20 = vmul.f32 %v1009_v46, %v995_v40  ;;  %v1040_v58 = vmul.f32 0.7978846, %v1032_v41  ;;  %v1031_v63 = vadd.f32 %v1023_v48, %v1775_v28  ;;  %v1026_v1 = vmul.f32 0.044715, %v1018_v34  ;;  %v1077_v46 = vpop.permute.xlu0 %1076 }
 0x3b9   :  { %v1025_v6 = vmul.f32 0.044715, %v1017_v20  ;;  %v1039_v52 = vmul.f32 0.7978846, %v1031_v63  ;;  %v1034_v53 = vadd.f32 %v1026_v1, %v1000_v37  ;;  %1436 = vtanh.f32 %v1040_v58 }
 0x3bb   :  { %v1033_v54 = vadd.f32 %v1025_v6, %v995_v40  ;;  %v1042_v56 = vmul.f32 0.7978846, %v1034_v53  ;;  %1438 = vtanh.f32 %v1039_v52 }
 0x3bd   :  { %v1041_v57 = vmul.f32 0.7978846, %v1033_v54  ;;  %1440 = vtanh.f32 %v1042_v56 }
 0x3bf   :  { %1442 = vtanh.f32 %v1041_v57 }
 0x3c0   :  { %1444 = vtanh.f32 %v1038_v55 }
 0x3c1   :  { %1446 = vtanh.f32 %v1037_v60 }
 0x3c2   :  { %1448 = vtanh.f32 %v1036_v61 }
 0x3c3   :  { %1450 = vtanh.f32 %v1035_v62 }
 0x3c6   :  { %v1437_v10 = vpop.eup %1436 }
 0x3c7   :  { %v1056_v3 = vadd.f32 1.0, %v1437_v10 }
 0x3c8   :  { %v1439_v0 = vpop.eup %1438 }
 0x3c9   :  { %v1055_v24 = vadd.f32 1.0, %v1439_v0  ;;  %v1064_v17 = vmul.f32 0.5, %v1056_v3 }
 0x3ca   :  { %v1441_v14 = vpop.eup %1440 }
 0x3cb   :  { %v1058_v11 = vadd.f32 1.0, %v1441_v14  ;;  %v1063_v29 = vmul.f32 0.5, %v1055_v24  ;;  %v1072_v35 = vmul.f32 %v1064_v17, %v1768_v16 }
 0x3cc   :  { %v1443_v2 = vpop.eup %1442 }
 0x3cd   :  { %v1445_v21 = vpop.eup %1444  ;;  %v1057_v4 = vadd.f32 1.0, %v1443_v2  ;;  %v1066_v7 = vmul.f32 0.5, %v1058_v11 }
 0x3ce   :  { %v1447_v25 = vpop.eup %1446  ;;  %v1054_v19 = vadd.f32 1.0, %v1445_v21 }
 0x3cf   :  { %v1065_v12 = vmul.f32 0.5, %v1057_v4  ;;  %v1074_v15 = vmul.f32 %v1066_v7, %v1000_v37  ;;  %v1449_v22 = vpop.eup %1448  ;;  %v1053_v30 = vadd.f32 1.0, %v1447_v25  ;;  %v1071_v37 = vmul.f32 %v1063_v29, %v1775_v28 }
 0x3d0   :  { %v1451_v31 = vpop.eup %1450  ;;  %v1062_v33 = vmul.f32 0.5, %v1054_v19  ;;  %v1052_v38 = vadd.f32 1.0, %v1449_v22 }
 0x3d1   :  { %v1073_v26 = vmul.f32 %v1065_v12, %v995_v40  ;;  %1360 = vmatpush3.msra.mxu0 %v1074_v15  ;;  %v1061_v39 = vmul.f32 0.5, %v1053_v30  ;;  %v1051_v42 = vadd.f32 1.0, %v1451_v31 }
 0x3d2   :  { %1361 = vmatprep.subr.mxu0 %v1466_v27  ;;  %v1070_v40 = vmul.f32 %v1062_v33, %v1756_v18  ;;  %v1060_v43 = vmul.f32 0.5, %v1052_v38  ;;  %v48_v18 = vld [vmem:[%s1820_s1 + $0xe8] sm:$0xff] }
 0x3d3   :  { %1362 = vmatpush3.msra.mxu0 %v1073_v26  ;;  %v1069_v16 = vmul.f32 %v1061_v39, %v1760_v23  ;;  %v1059_v44 = vmul.f32 0.5, %v1051_v42  ;;  %v1452_v23 = vld [vmem:[%s1819_s0] sm:$0xff] }
 0x3d4   :  { %1363 = vmatprep.subr.mxu0 %v1466_v27  ;;  %v1068_v45 = vmul.f32 %v1060_v43, %v1758_v8  ;;  %v1453_v8 = vld [vmem:[%s1819_s0 + $0x12] ss:$0 sm:$0xff] }
 0x3d5   :  { %1364 = vmatpush3.msra.mxu0 %v1072_v35  ;;  %v1067_v28 = vmul.f32 %v1059_v44, %v1764_v13  ;;  %v1153_v32 = vmul.f32 %v1453_v8, %v1452_v23 }
 0x3d6   :  { %1365 = vmatprep.subr.mxu0 %v1466_v27 }
 0x3d7   :  { %1366 = vmatpush3.msra.mxu0 %v1071_v37  ;;  %v1154_v13 = vsub.f32 %v1509_v5, %v1153_v32 }
 0x3d8   :  { %1367 = vmatprep.subr.mxu0 %v1466_v27 }
 0x3d9   :  { %1368 = vmatpush3.msra.mxu0 %v1070_v40 }
 0x3da   :  { %1369 = vmatprep.subr.mxu0 %v1466_v27 }
 0x3db   :  { %1370 = vmatpush3.msra.mxu0 %v1069_v16 }
 0x3dc   :  { %1371 = vmatprep.subr.mxu0 %v1466_v27 }
 0x3dd   :  { %1372 = vmatpush3.msra.mxu0 %v1068_v45 }
 0x3de   :  { %1373 = vmatprep.subr.mxu0 %v1466_v27 }
 0x3df   :  { %1374 = vmatpush3.msra.mxu0 %v1067_v28 }
 0x3e0   :  { %1376 = vmatmul.mubr.msk.f32.vlgmr.msra.gmra.mxu0 %vm457_vm2, %v48_v18 }
 0x4a0   :  { %v1148_v47 = vpop.f32.mrf.mxu0 }
 0x4a1   :  { %v1149_v41 = vadd.f32 %v1148_v47, %v1077_v46 }
 0x4a2   :  { %v1377_v48 = vpop.f32.mrf.mxu0 }
 0x4a3   :  { %v1155_v34 = vsub.f32 %v1149_v41, %v1154_v13 }
 0x4a5   :  { %v1156_v27 = vmul.f32 %v1155_v34, %v1155_v34 }
 0x4a7   :  { %1157 = vadd.xlane.f32.xlu1 %v1156_v27 }
 0x530   :  { %v1158_v9 = vpop.xlane.xlu1 %1157 }
 0x531   :  { %v1159_v20 = vrot.slane %v1158_v9, 4 }
 0x533   :  { %v1160_v49 = vadd.f32 %v1159_v20, %v1158_v9 }
 0x535   :  { %v1161_v58 = vrot.slane %v1160_v49, 2 }
 0x537   :  { %v1162_v63 = vadd.f32 %v1161_v58, %v1160_v49 }
 0x539   :  { %v1163_v1 = vrot.slane %v1162_v63, 1 }
 0x53b   :  { %v1164_v6 = vadd.f32 %v1163_v1, %v1162_v63 }
 0x53d   :  { %1378 = vpush %v1164_v6 }
 0x56e   :  { %s1379_s1 = spop %1378 }
 0x56f   :  { %s1166_s0 = smul.f32 0.0009765625, %s1379_s1 }
 0x571   :  { %1168 = sst [smem:[#allocation2]] %s1166_s0 }
 0x572   :  { %1176 = dma.smem_to_hbm %s1473_s21, 16, %s1821_s2, [#allocation3]  }
 0x573   :  { %1462 = dma.done.wait [#allocation3], 16  }
 0x574   :  { %1463 = vsyncadd [#allocation3], 4294967280 }
 0x575   :  { %1184 = sfence }
 0x576   :  { %1185 = vsyncpa [#allocation3], 1 }

</bundles_post_ra>
